<compile_context>
chip_gen: v6e
topology: v6e:2x2x1
jax: 0.10.0
libtpu: 0.0.40
codegen_flags: <defaults>
</compile_context>

<pallas_src>
import jax
import jax.numpy as jnp
from jax.experimental import pallas as pl
from jax.experimental.pallas import tpu as pltpu


def _edge_predictor_kernel(h_src_ref, h_pos_ref, h_neg_ref,
                           w_src_ref, w_dst_ref, b_sum_ref,
                           w_out_ref, b_out_ref,
                           pos_out_ref, neg_out_ref,
                           src_acc_ref):
    """One (row-tile i, neg-sample s) grid step."""
    s = pl.program_id(1)

    b_sum = b_sum_ref[...]        # (1, dim_out) f32  == b_src + b_dst
    w_out_row = w_out_ref[...]    # (1, dim_out) f32  == out_fc weight row
    b_out = b_out_ref[...]        # (1, 1)       f32

    # --- first sample of each row tile: src projection + positive edges ---
    @pl.when(s == 0)
    def _():
        # src_fc(h_src): computed once per tile, reused for every neg sample.
        src_acc_ref[...] = jnp.dot(h_src_ref[...], w_src_ref[...],
                                   preferred_element_type=jnp.float32)
        pos_pre = (src_acc_ref[...]
                   + jnp.dot(h_pos_ref[...], w_dst_ref[...],
                             preferred_element_type=jnp.float32)
                   + b_sum)
        pos_edge = jnp.maximum(pos_pre, 0.0)
        # out_fc as VPU multiply + lane reduce instead of an N=1 MXU matmul.
        pos_out_ref[...] = (jnp.sum(pos_edge * w_out_row, axis=-1,
                                    keepdims=True) + b_out)

    # --- negative edges for sample `s` of this row tile ---
    neg_pre = (src_acc_ref[...]
               + jnp.dot(h_neg_ref[...], w_dst_ref[...],
                         preferred_element_type=jnp.float32)
               + b_sum)
    neg_edge = jnp.maximum(neg_pre, 0.0)
    neg_out_ref[...] = (jnp.sum(neg_edge * w_out_row, axis=-1,
                                keepdims=True) + b_out)


def edge_predictor_forward(h_src, h_pos_dst, h_neg_dst, params,
                           neg_samples=1, tile_m=1024,
                           compute_dtype=jnp.bfloat16):
    """Fused Pallas implementation of EdgePredictor.forward."""
    n, dim_in = h_src.shape
    dim_out = params["w_src"].shape[1]
    n_neg = h_neg_dst.shape[0]
    assert n_neg == n * neg_samples

    # Row tile: multiple of 128 (lane aligned, bf16 sublane-safe), capped so
    # double-buffered tiles stay far below VMEM even on v7x (64 MiB).
    tile_m = min(int(tile_m), max(128, pl.cdiv(n, 128) * 128))
    n_tiles = pl.cdiv(n, tile_m)
    n_pad = n_tiles * tile_m

    cd = compute_dtype
    f32 = jnp.float32

    def pad_rows_2d(x):
        return jnp.pad(x, ((0, n_pad - x.shape[0]), (0, 0)))

    h_src_p = pad_rows_2d(h_src.astype(cd))
    h_pos_p = pad_rows_2d(h_pos_dst.astype(cd))
    # (neg_samples, n_pad, dim_in): row (s, r) pairs with h_src row r, exactly
    # matching torch's h_src.tile(neg_samples, 1) + h_neg_dst ordering.
    h_neg_p = jnp.pad(h_neg_dst.astype(cd).reshape(neg_samples, n, dim_in),
                      ((0, 0), (0, n_pad - n), (0, 0)))

    w_src = params["w_src"].astype(cd)
    w_dst = params["w_dst"].astype(cd)
    b_sum = (params["b_src"] + params["b_dst"]).astype(f32).reshape(1, dim_out)
    w_out = params["w_out"].astype(f32).reshape(1, dim_out)
    b_out = params["b_out"].astype(f32).reshape(1, 1)

    grid_spec = pltpu.PrefetchScalarGridSpec(
        num_scalar_prefetch=0,
        grid=(n_tiles, neg_samples),
        in_specs=[
            pl.BlockSpec((tile_m, dim_in), lambda i, s: (i, 0)),            # h_src
            pl.BlockSpec((tile_m, dim_in), lambda i, s: (i, 0)),            # h_pos_dst
            pl.BlockSpec((None, tile_m, dim_in), lambda i, s: (s, i, 0)),   # h_neg_dst
            pl.BlockSpec((dim_in, dim_out), lambda i, s: (0, 0)),           # w_src
            pl.BlockSpec((dim_in, dim_out), lambda i, s: (0, 0)),           # w_dst
            pl.BlockSpec((1, dim_out), lambda i, s: (0, 0)),                # b_src+b_dst
            pl.BlockSpec((1, dim_out), lambda i, s: (0, 0)),                # w_out row
            pl.BlockSpec((1, 1), lambda i, s: (0, 0)),                      # b_out
        ],
        out_specs=(
            pl.BlockSpec((tile_m, 1), lambda i, s: (i, 0)),                 # pos
            pl.BlockSpec((tile_m, 1), lambda i, s: (s * n_tiles + i, 0)),   # neg
        ),
        scratch_shapes=[pltpu.VMEM((tile_m, dim_out), jnp.float32)],
    )

    pos_pad, neg_pad = pl.pallas_call(
        _edge_predictor_kernel,
        grid_spec=grid_spec,
        out_shape=(jax.ShapeDtypeStruct((n_pad, 1), f32),
                   jax.ShapeDtypeStruct((neg_samples * n_pad, 1), f32)),
        compiler_params=pltpu.CompilerParams(
            dimension_semantics=("parallel", "arbitrary")),
    )(h_src_p, h_pos_p, h_neg_p, w_src, w_dst, b_sum, w_out, b_out)

    pos = pos_pad[:n]
    neg = neg_pad.reshape(neg_samples, n_pad, 1)[:, :n].reshape(n_neg, 1)
    return pos, neg


def init_params(key, dim_in_node, dim_out):
    """Deterministic init mimicking torch.nn.Linear.reset_parameters
    (uniform(-1/sqrt(fan_in), 1/sqrt(fan_in))). Weights pre-transposed to
    [in_features, out_features]."""
    ks = jax.random.split(key, 6)

    def lin(kw, kb, fan_in, fan_out):
        bound = 1.0 / jnp.sqrt(fan_in)
        w = jax.random.uniform(kw, (fan_in, fan_out), jnp.float32, -bound, bound)
        b = jax.random.uniform(kb, (1, fan_out), jnp.float32, -bound, bound)
        return w, b

    w_src, b_src = lin(ks[0], ks[1], dim_in_node, dim_out)
    w_dst, b_dst = lin(ks[2], ks[3], dim_in_node, dim_out)
    w_out, b_out = lin(ks[4], ks[5], dim_out, 1)
    return dict(w_src=w_src, b_src=b_src,
                w_dst=w_dst, b_dst=b_dst,
                w_out=w_out, b_out=b_out)


def reference_forward(h_src, h_pos_dst, h_neg_dst, p, neg_samples=1):
    hs = h_src @ p["w_src"] + p["b_src"]
    hp = h_pos_dst @ p["w_dst"] + p["b_dst"]
    hn = h_neg_dst @ p["w_dst"] + p["b_dst"]
    pos_e = jnp.maximum(hs + hp, 0.0)
    neg_e = jnp.maximum(jnp.tile(hs, (neg_samples, 1)) + hn, 0.0)
    return pos_e @ p["w_out"] + p["b_out"], neg_e @ p["w_out"] + p["b_out"]


if __name__ == "__main__":
    dim_in_node, dim_out = 32, 32
    n, neg_samples = 8, 2

    key = jax.random.PRNGKey(0)
    k_p, k1, k2, k3 = jax.random.split(key, 4)
    params = init_params(k_p, dim_in_node, dim_out)

    h_src = jax.random.normal(k1, (n, dim_in_node), jnp.float32)
    h_pos_dst = jax.random.normal(k2, (n, dim_in_node), jnp.float32)
    h_neg_dst = jax.random.normal(k3, (n * neg_samples, dim_in_node), jnp.float32)

    ref_pos, ref_neg = reference_forward(
        h_src, h_pos_dst, h_neg_dst, params, neg_samples=neg_samples)

    # f32 compute path: tight check of the kernel's indexing / algebra.
    pos32, neg32 = edge_predictor_forward(
        h_src, h_pos_dst, h_neg_dst, params, neg_samples=neg_samples,
        compute_dtype=jnp.float32)
    jax.block_until_ready((pos32, neg32))
    assert pos32.shape == (n, 1) and neg32.shape == (n * neg_samples, 1)
    assert jnp.allclose(pos32, ref_pos, atol=1e-2, rtol=1e-2)
    assert jnp.allclose(neg32, ref_neg, atol=1e-2, rtol=1e-2)

    # bf16 compute path (default, bandwidth-optimized configuration).
    pos_bf, neg_bf = edge_predictor_forward(
        h_src, h_pos_dst, h_neg_dst, params, neg_samples=neg_samples)
    jax.block_until_ready((pos_bf, neg_bf))
    assert pos_bf.shape == (n, 1) and neg_bf.shape == (n * neg_samples, 1)
    assert jnp.allclose(pos_bf, ref_pos, atol=7.5e-2, rtol=7.5e-2)
    assert jnp.allclose(neg_bf, ref_neg, atol=7.5e-2, rtol=7.5e-2)

    print("KERNEL_OK")
</pallas_src>

<mosaic_0001>
module attributes {stable_mosaic.version = 11 : i64} {
  func.func @_edge_predictor_kernel(%arg0: i32, %arg1: i32, %arg2: memref<128x32xf32, #tpu.memory_space<vmem>>, %arg3: memref<128x32xf32, #tpu.memory_space<vmem>>, %arg4: memref<1x128x32xf32, #tpu.memory_space<vmem>>, %arg5: memref<32x32xf32, #tpu.memory_space<vmem>>, %arg6: memref<32x32xf32, #tpu.memory_space<vmem>>, %arg7: memref<1x32xf32, #tpu.memory_space<vmem>>, %arg8: memref<1x32xf32, #tpu.memory_space<vmem>>, %arg9: memref<1x1xf32, #tpu.memory_space<vmem>>, %arg10: memref<128x1xf32, #tpu.memory_space<vmem>>, %arg11: memref<128x1xf32, #tpu.memory_space<vmem>>, %arg12: memref<128x32xf32, #tpu.memory_space<vmem>>) attributes {dimension_semantics = [#tpu.dimension_semantics<parallel>, #tpu.dimension_semantics<arbitrary>], iteration_bounds = array<i64: 1, 2>, scalar_prefetch = 0 : i64, scratch_operands = 1 : i64, tpu.core_type = #tpu.core_type<tc>, window_params = [{transform_indices = @transform_0, window_bounds = array<i64: 128, 32>}, {transform_indices = @transform_1, window_bounds = array<i64: 128, 32>}, {transform_indices = @transform_2, window_bounds = array<i64: 1, 128, 32>}, {pipeline_mode = #tpu.pipeline_mode<synchronous>, transform_indices = @transform_3, window_bounds = array<i64: 32, 32>}, {pipeline_mode = #tpu.pipeline_mode<synchronous>, transform_indices = @transform_4, window_bounds = array<i64: 32, 32>}, {pipeline_mode = #tpu.pipeline_mode<synchronous>, transform_indices = @transform_5, window_bounds = array<i64: 1, 32>}, {pipeline_mode = #tpu.pipeline_mode<synchronous>, transform_indices = @transform_6, window_bounds = array<i64: 1, 32>}, {pipeline_mode = #tpu.pipeline_mode<synchronous>, transform_indices = @transform_7, window_bounds = array<i64: 1, 1>}, {transform_indices = @transform_8, window_bounds = array<i64: 128, 1>}, {transform_indices = @transform_9, window_bounds = array<i64: 128, 1>}]} {
    %c0 = arith.constant 0 : index
    %c0_0 = arith.constant 0 : index
    %0 = vector.load %arg7[%c0, %c0_0] : memref<1x32xf32, #tpu.memory_space<vmem>>, vector<1x32xf32>
    %c0_1 = arith.constant 0 : index
    %c0_2 = arith.constant 0 : index
    %1 = vector.load %arg8[%c0_1, %c0_2] : memref<1x32xf32, #tpu.memory_space<vmem>>, vector<1x32xf32>
    %c0_3 = arith.constant 0 : index
    %c0_4 = arith.constant 0 : index
    %2 = vector.load %arg9[%c0_3, %c0_4] : memref<1x1xf32, #tpu.memory_space<vmem>>, vector<1x1xf32>
    %c0_i32 = arith.constant 0 : i32
    %3 = arith.cmpi eq, %arg1, %c0_i32 : i32
    %4 = arith.extui %3 : i1 to i32
    %c0_i32_5 = arith.constant 0 : i32
    %5 = arith.cmpi ne, %4, %c0_i32_5 : i32
    scf.if %5 {
      %c0_17 = arith.constant 0 : index
      %c0_18 = arith.constant 0 : index
      %23 = vector.load %arg2[%c0_17, %c0_18] : memref<128x32xf32, #tpu.memory_space<vmem>>, vector<128x32xf32>
      %c0_19 = arith.constant 0 : index
      %c0_20 = arith.constant 0 : index
      %24 = vector.load %arg5[%c0_19, %c0_20] : memref<32x32xf32, #tpu.memory_space<vmem>>, vector<32x32xf32>
      %cst_21 = arith.constant dense<0.000000e+00> : vector<128x32xf32>
      %25 = tpu.matmul %23, %24, %cst_21 {dimension_numbers = #tpu.dot_dimension_numbers<[1], [0], [0], [1], [0, 0, 1, 1], [], []>} : vector<128x32xf32>, vector<32x32xf32>, vector<128x32xf32> -> vector<128x32xf32>
      %c0_22 = arith.constant 0 : index
      %c0_23 = arith.constant 0 : index
      %26 = vector.load %arg12[%c0_22, %c0_23] : memref<128x32xf32, #tpu.memory_space<vmem>>, vector<128x32xf32>
      tpu.vector_store %arg12[%c0_22, %c0_23], %25 {strides = array<i32>} : memref<128x32xf32, #tpu.memory_space<vmem>>, vector<128x32xf32>,
      %c0_24 = arith.constant 0 : index
      %c0_25 = arith.constant 0 : index
      %27 = vector.load %arg12[%c0_24, %c0_25] : memref<128x32xf32, #tpu.memory_space<vmem>>, vector<128x32xf32>
      %c0_26 = arith.constant 0 : index
      %c0_27 = arith.constant 0 : index
      %28 = vector.load %arg3[%c0_26, %c0_27] : memref<128x32xf32, #tpu.memory_space<vmem>>, vector<128x32xf32>
      %c0_28 = arith.constant 0 : index
      %c0_29 = arith.constant 0 : index
      %29 = vector.load %arg6[%c0_28, %c0_29] : memref<32x32xf32, #tpu.memory_space<vmem>>, vector<32x32xf32>
      %cst_30 = arith.constant dense<0.000000e+00> : vector<128x32xf32>
      %30 = tpu.matmul %28, %29, %cst_30 {dimension_numbers = #tpu.dot_dimension_numbers<[1], [0], [0], [1], [0, 0, 1, 1], [], []>} : vector<128x32xf32>, vector<32x32xf32>, vector<128x32xf32> -> vector<128x32xf32>
      %31 = arith.addf %27, %30 : vector<128x32xf32>
      %32 = vector.broadcast %0 : vector<1x32xf32> to vector<128x32xf32>
      %33 = arith.addf %31, %32 : vector<128x32xf32>
      %cst_31 = arith.constant 0.000000e+00 : f32
      %34 = vector.broadcast %cst_31 : f32 to vector<128x32xf32>
      %35 = arith.maximumf %33, %34 : vector<128x32xf32>
      %36 = vector.broadcast %1 : vector<1x32xf32> to vector<128x32xf32>
      %37 = arith.mulf %35, %36 : vector<128x32xf32>
      %cst_32 = arith.constant dense<0.000000e+00> : vector<128xf32>
      %38 = vector.multi_reduction <add>, %37, %cst_32 [1] : vector<128x32xf32> to vector<128xf32>
      %39 = vector.shape_cast %38 : vector<128xf32> to vector<128x1xf32>
      %40 = vector.broadcast %2 : vector<1x1xf32> to vector<128x1xf32>
      %41 = arith.addf %39, %40 : vector<128x1xf32>
      %c0_33 = arith.constant 0 : index
      %c0_34 = arith.constant 0 : index
      %42 = vector.load %arg10[%c0_33, %c0_34] : memref<128x1xf32, #tpu.memory_space<vmem>>, vector<128x1xf32>
      tpu.vector_store %arg10[%c0_33, %c0_34], %41 {strides = array<i32>} : memref<128x1xf32, #tpu.memory_space<vmem>>, vector<128x1xf32>,
    } else {
    }
    %c0_6 = arith.constant 0 : index
    %c0_7 = arith.constant 0 : index
    %6 = vector.load %arg12[%c0_6, %c0_7] : memref<128x32xf32, #tpu.memory_space<vmem>>, vector<128x32xf32>
    %c0_8 = arith.constant 0 : index
    %c0_9 = arith.constant 0 : index
    %c0_10 = arith.constant 0 : index
    %7 = vector.load %arg4[%c0_8, %c0_9, %c0_10] : memref<1x128x32xf32, #tpu.memory_space<vmem>>, vector<1x128x32xf32>
    %8 = vector.shape_cast %7 : vector<1x128x32xf32> to vector<128x32xf32>
    %c0_11 = arith.constant 0 : index
    %c0_12 = arith.constant 0 : index
    %9 = vector.load %arg6[%c0_11, %c0_12] : memref<32x32xf32, #tpu.memory_space<vmem>>, vector<32x32xf32>
    %cst = arith.constant dense<0.000000e+00> : vector<128x32xf32>
    %10 = tpu.matmul %8, %9, %cst {dimension_numbers = #tpu.dot_dimension_numbers<[1], [0], [0], [1], [0, 0, 1, 1], [], []>} : vector<128x32xf32>, vector<32x32xf32>, vector<128x32xf32> -> vector<128x32xf32>
    %11 = arith.addf %6, %10 : vector<128x32xf32>
    %12 = vector.broadcast %0 : vector<1x32xf32> to vector<128x32xf32>
    %13 = arith.addf %11, %12 : vector<128x32xf32>
    %cst_13 = arith.constant 0.000000e+00 : f32
    %14 = vector.broadcast %cst_13 : f32 to vector<128x32xf32>
    %15 = arith.maximumf %13, %14 : vector<128x32xf32>
    %16 = vector.broadcast %1 : vector<1x32xf32> to vector<128x32xf32>
    %17 = arith.mulf %15, %16 : vector<128x32xf32>
    %cst_14 = arith.constant dense<0.000000e+00> : vector<128xf32>
    %18 = vector.multi_reduction <add>, %17, %cst_14 [1] : vector<128x32xf32> to vector<128xf32>
    %19 = vector.shape_cast %18 : vector<128xf32> to vector<128x1xf32>
    %20 = vector.broadcast %2 : vector<1x1xf32> to vector<128x1xf32>
    %21 = arith.addf %19, %20 : vector<128x1xf32>
    %c0_15 = arith.constant 0 : index
    %c0_16 = arith.constant 0 : index
    %22 = vector.load %arg11[%c0_15, %c0_16] : memref<128x1xf32, #tpu.memory_space<vmem>>, vector<128x1xf32>
    tpu.vector_store %arg11[%c0_15, %c0_16], %21 {strides = array<i32>} : memref<128x1xf32, #tpu.memory_space<vmem>>, vector<128x1xf32>,
    return
  }
  func.func @transform_0(%arg0: i32, %arg1: i32) -> (i32, i32) {
    %c0_i32 = arith.constant 0 : i32
    %c0_i32_0 = arith.constant 0 : i32
    return %arg0, %c0_i32 : i32, i32
  }
  func.func @transform_1(%arg0: i32, %arg1: i32) -> (i32, i32) {
    %c0_i32 = arith.constant 0 : i32
    %c0_i32_0 = arith.constant 0 : i32
    return %arg0, %c0_i32 : i32, i32
  }
  func.func @transform_2(%arg0: i32, %arg1: i32) -> (i32, i32, i32) {
    %c0_i32 = arith.constant 0 : i32
    %c0_i32_0 = arith.constant 0 : i32
    return %arg1, %arg0, %c0_i32 : i32, i32, i32
  }
  func.func @transform_3(%arg0: i32, %arg1: i32) -> (i32, i32) {
    %c0_i32 = arith.constant 0 : i32
    %c0_i32_0 = arith.constant 0 : i32
    %c0_i32_1 = arith.constant 0 : i32
    return %c0_i32, %c0_i32_0 : i32, i32
  }
  func.func @transform_4(%arg0: i32, %arg1: i32) -> (i32, i32) {
    %c0_i32 = arith.constant 0 : i32
    %c0_i32_0 = arith.constant 0 : i32
    %c0_i32_1 = arith.constant 0 : i32
    return %c0_i32, %c0_i32_0 : i32, i32
  }
  func.func @transform_5(%arg0: i32, %arg1: i32) -> (i32, i32) {
    %c0_i32 = arith.constant 0 : i32
    %c0_i32_0 = arith.constant 0 : i32
    %c0_i32_1 = arith.constant 0 : i32
    return %c0_i32, %c0_i32_0 : i32, i32
  }
  func.func @transform_6(%arg0: i32, %arg1: i32) -> (i32, i32) {
    %c0_i32 = arith.constant 0 : i32
    %c0_i32_0 = arith.constant 0 : i32
    %c0_i32_1 = arith.constant 0 : i32
    return %c0_i32, %c0_i32_0 : i32, i32
  }
  func.func @transform_7(%arg0: i32, %arg1: i32) -> (i32, i32) {
    %c0_i32 = arith.constant 0 : i32
    %c0_i32_0 = arith.constant 0 : i32
    %c0_i32_1 = arith.constant 0 : i32
    return %c0_i32, %c0_i32_0 : i32, i32
  }
  func.func @transform_8(%arg0: i32, %arg1: i32) -> (i32, i32) {
    %c0_i32 = arith.constant 0 : i32
    %c0_i32_0 = arith.constant 0 : i32
    return %arg0, %c0_i32 : i32, i32
  }
  func.func @transform_9(%arg0: i32, %arg1: i32) -> (i32, i32) {
    %c1_i32 = arith.constant 1 : i32
    %0 = arith.muli %arg1, %c1_i32 : i32
    %1 = arith.addi %0, %arg0 : i32
    %c0_i32 = arith.constant 0 : i32
    %c0_i32_0 = arith.constant 0 : i32
    return %1, %c0_i32 : i32, i32
  }
}

</mosaic_0001>

<bundles_post_ra>
// kernel: tpu_custom_call.1
= control target key start
LH: loop header
LB: loop body
LE: loop exit
PB: predicated region body
PF: predicated region fallthrough
CT: control target
= control target key end

     0   :  { %s1914_s11 = smov 0   ;;  %s1916_s12 = smov 0   ;;  %s2391_s0 = inlined_call_operand.vmem [shape: f32[128,32], index: 0, kind: input, shape index: {}]   ;;  %s2392_s1 = inlined_call_operand.vmem [shape: f32[128,32], index: 1, kind: input, shape index: {}]   ;;  %s2393_s2 = inlined_call_operand.vmem [shape: f32[2,128,32], index: 2, kind: input, shape index: {}]   ;;  %s2394_s3 = inlined_call_operand.vmem [shape: f32[32,32], index: 3, kind: input, shape index: {}]   ;;  %s2395_s4 = inlined_call_operand.vmem [shape: f32[32,32], index: 4, kind: input, shape index: {}]   ;;  %s2396_s5 = inlined_call_operand.vmem [shape: f32[1,32], index: 5, kind: input, shape index: {}]   ;;  %s2397_s6 = inlined_call_operand.vmem [shape: f32[1,32], index: 6, kind: input, shape index: {}]   ;;  %s2398_s7 = inlined_call_operand.<no memory space> [shape: f32[1,1], index: 7, kind: input, shape index: {}]   ;;  %s2399_s8 = inlined_call_operand.vmem [shape: f32[128,1], index: 8, kind: output, shape index: {0}]   ;;  %s2400_s9 = inlined_call_operand.vmem [shape: f32[256,1], index: 9, kind: output, shape index: {1}]  }
   0x1   :  { %v15_v0 = vstv %s2398_s7  ;;  %s1918_s13 = smov 0  }
   0x2   :  { %16 = vst [vmem:[#allocation3] sm:$0x1] %v15_v0 }
   0x3 LB: > { %s31_s7 = sadd.s32 1, %s1855_s12  ;;  %p1590_p0 = scmp.ge.s32.totalorder %s1859_s13, 1  ;;  %s1859_s13 = sphi %s1918_s13, %s22_s13   ;;  %s1855_s12 = sphi %s1916_s12, %s2402_s12   ;;  %s1851_s11 = sphi %s1914_s11, %s2401_s11  }
   0x4   : > { %p32_p1 = scmp.ge.s32.totalorder %s31_s7, 2  ;;  %p335_p2 = scmp.lt.s32.totalorder %s1859_s13, 3 }
   0x6   : > { %s2404_s7 = smov (%p32_p1, %s31_s7), 0  ;;  %p336_p3 = pnand %p1590_p0, %p335_p2 }
   0x7   : > { %p404_p4 = scmp.lt.s32.totalorder (!%p336_p3), %s1851_s11, 1  ;;  %s1593_s14 = sshll.u32 (!%p336_p3), %s1851_s11, 4 }
   0x8   : > { %339 = sbr.rel (%p336_p3) target bundleno = 793 (0x319), region = 52  ;;  %p421_p5 = scmp.lt.s32.totalorder (!%p336_p3), %s1593_s14, 31 }
   0x9   : > { %p1595_p6 = scmp.ne.s32.totalorder (!%p336_p3), %s1851_s11, 0 }
   0xd   : > { %v1935_v1 = vld [vmem:[%s2396_s5] sm:$0x1]  ;;  %s405_s19 = scalar_select %p404_p4, %s1851_s11, 1 }
   0xe   : > { %v1940_v2 = vld [vmem:[%s2397_s6] sm:$0x1]  ;;  %s2406_s14 = smov (!%p421_p5, %s1593_s14), 31  ;;  %433 = sbr.rel (%p1595_p6) target bundleno = 411 (0x19b), region = 56 }
   0xf   : > { %v1942_v3 = vld [vmem:[#allocation3] sm:$0x1]  ;;  %s1648_s20 = sshll.u32 %s405_s19, 7  ;;  %s1594_s24 = sshll.u32 %s2406_s14, 3 }
  0x10   : > { %s1947_s23 = scalar_lea.vmem %s2393_s2, %s1648_s20  ;;  %s1952_s27 = scalar_lea.vmem %s2400_s9, %s1594_s24 }
  0x13   : > { %v453_v4 = vld [vmem:[%s2394_s3 + $0x18] sm:$0xff]  ;;  %v452_v5 = vld [vmem:[%s2394_s3 + $0x10] sm:$0xff]  ;;  %vm454_vm0 = vcmask 261120   ;;  %v434_v7 = vld [vmem:[%s2391_s0] sm:$0xff]  ;;  %v910_v44 = vlaneseq  ;;  %vm1039_vm1 = vcmask 7168  }
  0x14   : > { %1709 = vmatprep.subr.mxu0 %v453_v4  ;;  %v699_v6 = vld [vmem:[%s2395_s4 + $0x18] sm:$0xff]  ;;  %v451_v8 = vld [vmem:[%s2394_s3 + $0x8] sm:$0xff]  ;;  %v698_v9 = vld [vmem:[%s2395_s4 + $0x10] sm:$0xff]  ;;  %1717 = vmatprep.mubr.msk.f32.mxu0 %vm454_vm0, %v434_v7 }
  0x15   : > { %1710 = vmatpush3.msra.mxu0 %v453_v4  ;;  %1741 = vmatprep.subr.mxu1 %v699_v6  ;;  %v450_v10 = vld [vmem:[%s2394_s3] sm:$0xff]  ;;  %v697_v11 = vld [vmem:[%s2395_s4 + $0x8] sm:$0xff]  ;;  %v436_v14 = vld [vmem:[%s2391_s0 + $0x10] sm:$0xff]  ;;  %v911_v45 = vshrl.u32 %v910_v44, 7 }
  0x16   : > { %1711 = vmatprep.subr.mxu0 %v452_v5  ;;  %1742 = vmatpush3.msra.mxu1 %v699_v6  ;;  %v435_v12 = vld [vmem:[%s2391_s0 + $0x8] sm:$0xff]  ;;  %v696_v13 = vld [vmem:[%s2395_s4] sm:$0xff]  ;;  %v437_v17 = vld [vmem:[%s2391_s0 + $0x18] sm:$0xff] }
  0x17   : > { %1712 = vmatpush3.msra.mxu0 %v452_v5  ;;  %1743 = vmatprep.subr.mxu1 %v698_v9  ;;  %v680_v15 = vld [vmem:[%s2392_s1] sm:$0xff]  ;;  %v681_v16 = vld [vmem:[%s2392_s1 + $0x8] sm:$0xff]  ;;  %v682_v18 = vld [vmem:[%s2392_s1 + $0x10] sm:$0xff]  ;;  %v2108_v49 = vsub.s32 0, %v911_v45 }
  0x18   : > { %1713 = vmatprep.subr.mxu0 %v451_v8  ;;  %1744 = vmatpush3.msra.mxu1 %v698_v9  ;;  %v438_v19 = vld [vmem:[%s2391_s0 + $0x20] sm:$0xff]  ;;  %v683_v20 = vld [vmem:[%s2392_s1 + $0x18] sm:$0xff]  ;;  %v439_v21 = vld [vmem:[%s2391_s0 + $0x28] sm:$0xff] }
  0x19   : > { %1714 = vmatpush3.msra.mxu0 %v451_v8  ;;  %1745 = vmatprep.subr.mxu1 %v697_v11  ;;  %v684_v22 = vld [vmem:[%s2392_s1 + $0x20] sm:$0xff]  ;;  %v440_v23 = vld [vmem:[%s2391_s0 + $0x30] sm:$0xff]  ;;  %v685_v24 = vld [vmem:[%s2392_s1 + $0x28] sm:$0xff]  ;;  %v2114_v53 = vrot.slane %v1935_v1, %v2108_v49  ;;  %v2121_v0 = vrot.slane %v1940_v2, %v2108_v49 }
  0x1a   : > { %1715 = vmatprep.subr.mxu0 %v450_v10  ;;  %1746 = vmatpush3.msra.mxu1 %v697_v11  ;;  %v441_v25 = vld [vmem:[%s2391_s0 + $0x38] sm:$0xff]  ;;  %v686_v26 = vld [vmem:[%s2392_s1 + $0x30] sm:$0xff]  ;;  %v442_v27 = vld [vmem:[%s2391_s0 + $0x40] sm:$0xff] }
  0x1b   : > { %1716 = vmatpush3.msra.mxu0 %v450_v10  ;;  %1747 = vmatprep.subr.mxu1 %v696_v13  ;;  %v687_v28 = vld [vmem:[%s2392_s1 + $0x38] sm:$0xff]  ;;  %v443_v29 = vld [vmem:[%s2391_s0 + $0x48] sm:$0xff]  ;;  %v688_v30 = vld [vmem:[%s2392_s1 + $0x40] sm:$0xff] }
  0x1c   : > { %1718 = vmatmul.mubr.msk.f32.vlgmr.msra.gmra.mxu0 %vm454_vm0, %v435_v12  ;;  %1748 = vmatpush3.msra.mxu1 %v696_v13  ;;  %v444_v31 = vld [vmem:[%s2391_s0 + $0x50] sm:$0xff]  ;;  %v689_v32 = vld [vmem:[%s2392_s1 + $0x48] sm:$0xff]  ;;  %v445_v33 = vld [vmem:[%s2391_s0 + $0x58] sm:$0xff] }
  0x1d   : > { %1720 = vmatprep.mubr.msk.f32.mxu0 %vm454_vm0, %v436_v14  ;;  %1749 = vmatprep.mubr.msk.f32.mxu1 %vm454_vm0, %v680_v15  ;;  %v690_v34 = vld [vmem:[%s2392_s1 + $0x50] sm:$0xff]  ;;  %v446_v35 = vld [vmem:[%s2391_s0 + $0x60] sm:$0xff]  ;;  %v691_v36 = vld [vmem:[%s2392_s1 + $0x58] sm:$0xff] }
  0x1e   : > { %1750 = vmatmul.mubr.msk.f32.vlgmr.msra.gmra.mxu1 %vm454_vm0, %v681_v16  ;;  %v447_v37 = vld [vmem:[%s2391_s0 + $0x68] sm:$0xff]  ;;  %v692_v38 = vld [vmem:[%s2392_s1 + $0x60] sm:$0xff]  ;;  %v448_v39 = vld [vmem:[%s2391_s0 + $0x70] sm:$0xff] }
  0x1f   : > { %1752 = vmatprep.mubr.msk.f32.mxu1 %vm454_vm0, %v682_v18  ;;  %v693_v40 = vld [vmem:[%s2392_s1 + $0x68] sm:$0xff]  ;;  %v449_v41 = vld [vmem:[%s2391_s0 + $0x78] sm:$0xff]  ;;  %v694_v42 = vld [vmem:[%s2392_s1 + $0x70] sm:$0xff] }
  0x20   : > { %1721 = vmatmul.mubr.msk.f32.gmra.mxu0 %vm454_vm0, %v437_v17  ;;  %v695_v43 = vld [vmem:[%s2392_s1 + $0x78] sm:$0xff] }
  0x21   : > { %1723 = vmatprep.mubr.msk.f32.mxu0 %vm454_vm0, %v438_v19 }
  0x22   : > { %1753 = vmatmul.mubr.msk.f32.gmra.mxu1 %vm454_vm0, %v683_v20 }
  0x23   : > { %1755 = vmatprep.mubr.msk.f32.mxu1 %vm454_vm0, %v684_v22 }
  0x24   : > { %1724 = vmatmul.mubr.msk.f32.gmra.mxu0 %vm454_vm0, %v439_v21 }
  0x25   : > { %1726 = vmatprep.mubr.msk.f32.mxu0 %vm454_vm0, %v440_v23 }
  0x26   : > { %1756 = vmatmul.mubr.msk.f32.gmra.mxu1 %vm454_vm0, %v685_v24 }
  0x27   : > { %1758 = vmatprep.mubr.msk.f32.mxu1 %vm454_vm0, %v686_v26 }
  0x28   : > { %1727 = vmatmul.mubr.msk.f32.gmra.mxu0 %vm454_vm0, %v441_v25 }
  0x29   : > { %1729 = vmatprep.mubr.msk.f32.mxu0 %vm454_vm0, %v442_v27 }
  0x2a   : > { %1759 = vmatmul.mubr.msk.f32.gmra.mxu1 %vm454_vm0, %v687_v28 }
  0x2b   : > { %1761 = vmatprep.mubr.msk.f32.mxu1 %vm454_vm0, %v688_v30 }
  0x2c   : > { %1730 = vmatmul.mubr.msk.f32.gmra.mxu0 %vm454_vm0, %v443_v29 }
  0x2d   : > { %1732 = vmatprep.mubr.msk.f32.mxu0 %vm454_vm0, %v444_v31 }
  0x2e   : > { %1762 = vmatmul.mubr.msk.f32.gmra.mxu1 %vm454_vm0, %v689_v32 }
  0x2f   : > { %1764 = vmatprep.mubr.msk.f32.mxu1 %vm454_vm0, %v690_v34 }
  0x30   : > { %1733 = vmatmul.mubr.msk.f32.gmra.mxu0 %vm454_vm0, %v445_v33 }
  0x31   : > { %1735 = vmatprep.mubr.msk.f32.mxu0 %vm454_vm0, %v446_v35 }
  0x32   : > { %1765 = vmatmul.mubr.msk.f32.gmra.mxu1 %vm454_vm0, %v691_v36 }
  0x33   : > { %1767 = vmatprep.mubr.msk.f32.mxu1 %vm454_vm0, %v692_v38 }
  0x34   : > { %1736 = vmatmul.mubr.msk.f32.gmra.mxu0 %vm454_vm0, %v447_v37 }
  0x35   : > { %1738 = vmatprep.mubr.msk.f32.mxu0 %vm454_vm0, %v448_v39 }
  0x36   : > { %1768 = vmatmul.mubr.msk.f32.gmra.mxu1 %vm454_vm0, %v693_v40 }
  0x37   : > { %1770 = vmatprep.mubr.msk.f32.mxu1 %vm454_vm0, %v694_v42 }
  0x38   : > { %1739 = vmatmul.mubr.msk.f32.gmra.mxu0 %vm454_vm0, %v449_v41 }
  0x3a   : > { %1771 = vmatmul.mubr.msk.f32.gmra.mxu1 %vm454_vm0, %v695_v43 }
  0xdc   : > { %v1719_v46 = vpop.f32.mrf.mxu0 }
  0xdd   : > { %649 = vst.msk [vmem:[#allocation2 + $0x8] sm:$0xff] %vm454_vm0, %v1719_v46 }
  0xde   : > { %v569_v47 = vpop.f32.mrf.mxu0  ;;  %v1751_v48 = vpop.f32.mrf.mxu1 }
  0xdf   : > { %648 = vst.msk [vmem:[#allocation2] sm:$0xff] %vm454_vm0, %v569_v47 }
  0xe0   : > { %v1722_v50 = vpop.f32.mrf.mxu0  ;;  %v814_v51 = vpop.f32.mrf.mxu1 }
  0xe1   : > { %651 = vst.msk [vmem:[#allocation2 + $0x18] sm:$0xff] %vm454_vm0, %v1722_v50 }
  0xe2   : > { %v579_v52 = vpop.f32.mrf.mxu0  ;;  %v1754_v54 = vpop.f32.mrf.mxu1 }
  0xe3   : > { %650 = vst.msk [vmem:[#allocation2 + $0x10] sm:$0xff] %vm454_vm0, %v579_v52 }
  0xe4   : > { %v665_v55 = vld [vmem:[#allocation2 + $0x8] sm:$0xff]  ;;  %v1725_v56 = vpop.f32.mrf.mxu0  ;;  %v824_v58 = vpop.f32.mrf.mxu1 }
  0xe5   : > { %v894_v57 = vadd.f32 %v1751_v48, %v665_v55  ;;  %653 = vst.msk [vmem:[#allocation2 + $0x28] sm:$0xff] %vm454_vm0, %v1725_v56 }
  0xe6   : > { %v664_v59 = vld [vmem:[#allocation2] sm:$0xff]  ;;  %v589_v60 = vpop.f32.mrf.mxu0  ;;  %v1757_v63 = vpop.f32.mrf.mxu1 }
  0xe7   : > { %v916_v61 = vadd.f32 %v2114_v53, %v894_v57  ;;  %v893_v62 = vadd.f32 %v814_v51, %v664_v59  ;;  %652 = vst.msk [vmem:[#allocation2 + $0x20] sm:$0xff] %vm454_vm0, %v589_v60 }
  0xe8   : > { %v667_v4 = vld [vmem:[#allocation2 + $0x18] sm:$0xff]  ;;  %v1728_v5 = vpop.f32.mrf.mxu0  ;;  %v834_v9 = vpop.f32.mrf.mxu1 }
  0xe9   : > { %v932_v6 = vmax.f32 %v916_v61, 0.0  ;;  %v915_v7 = vadd.f32 %v2114_v53, %v893_v62  ;;  %v896_v8 = vadd.f32 %v1754_v54, %v667_v4  ;;  %655 = vst.msk [vmem:[#allocation2 + $0x38] sm:$0xff] %vm454_vm0, %v1728_v5 }
  0xea   : > { %v666_v10 = vld [vmem:[#allocation2 + $0x10] sm:$0xff]  ;;  %v599_v11 = vpop.f32.mrf.mxu0  ;;  %v1760_v16 = vpop.f32.mrf.mxu1 }
  0xeb   : > { %v931_v12 = vmax.f32 %v915_v7, 0.0  ;;  %v918_v13 = vadd.f32 %v2114_v53, %v896_v8  ;;  %v895_v14 = vadd.f32 %v824_v58, %v666_v10  ;;  %654 = vst.msk [vmem:[#allocation2 + $0x30] sm:$0xff] %vm454_vm0, %v599_v11  ;;  %v954_v15 = vmul.f32 %v2121_v0, %v932_v6 }
  0xec   : > { %v1731_v17 = vpop.f32.mrf.mxu0  ;;  %v669_v18 = vld [vmem:[#allocation2 + $0x28] sm:$0xff]  ;;  %v844_v23 = vpop.f32.mrf.mxu1 }
  0xed   : > { %v934_v19 = vmax.f32 %v918_v13, 0.0  ;;  %v917_v20 = vadd.f32 %v2114_v53, %v895_v14  ;;  %657 = vst.msk [vmem:[#allocation2 + $0x48] sm:$0xff] %vm454_vm0, %v1731_v17  ;;  %v898_v21 = vadd.f32 %v1757_v63, %v669_v18  ;;  %v972_v22 = vsel %vm454_vm0, %v954_v15, 0.0 }
  0xee   : > { %v668_v24 = vld [vmem:[#allocation2 + $0x20] sm:$0xff]  ;;  %973 = vadd.xlane.f32.xlu0 %v972_v22  ;;  %v609_v25 = vpop.f32.mrf.mxu0  ;;  %v953_v26 = vmul.f32 %v2121_v0, %v931_v12  ;;  %v1763_v31 = vpop.f32.mrf.mxu1 }
  0xef   : > { %v933_v27 = vmax.f32 %v917_v20, 0.0  ;;  %v920_v28 = vadd.f32 %v2114_v53, %v898_v21  ;;  %v897_v29 = vadd.f32 %v834_v9, %v668_v24  ;;  %656 = vst.msk [vmem:[#allocation2 + $0x40] sm:$0xff] %vm454_vm0, %v609_v25  ;;  %v956_v30 = vmul.f32 %v2121_v0, %v934_v19 }
  0xf0   : > { %v1734_v32 = vpop.f32.mrf.mxu0  ;;  %v671_v33 = vld [vmem:[#allocation2 + $0x38] sm:$0xff]  ;;  %v969_v34 = vsel %vm454_vm0, %v953_v26, 0.0  ;;  %v854_v39 = vpop.f32.mrf.mxu1 }
  0xf1   : > { %v936_v35 = vmax.f32 %v920_v28, 0.0  ;;  %v919_v36 = vadd.f32 %v2114_v53, %v897_v29  ;;  %659 = vst.msk [vmem:[#allocation2 + $0x58] sm:$0xff] %vm454_vm0, %v1734_v32  ;;  %v900_v37 = vadd.f32 %v1760_v16, %v671_v33  ;;  %v978_v38 = vsel %vm454_vm0, %v956_v30, 0.0 }
  0xf2   : > { %v670_v40 = vld [vmem:[#allocation2 + $0x30] sm:$0xff]  ;;  %970 = vadd.xlane.f32.xlu0 %v969_v34  ;;  %979 = vadd.xlane.f32.xlu1 %v978_v38  ;;  %v619_v41 = vpop.f32.mrf.mxu0  ;;  %v955_v42 = vmul.f32 %v2121_v0, %v933_v27  ;;  %v1766_v46 = vpop.f32.mrf.mxu1 }
  0xf3   : > { %v935_v43 = vmax.f32 %v919_v36, 0.0  ;;  %v922_v44 = vadd.f32 %v2114_v53, %v900_v37  ;;  %v899_v45 = vadd.f32 %v844_v23, %v670_v40  ;;  %658 = vst.msk [vmem:[#allocation2 + $0x50] sm:$0xff] %vm454_vm0, %v619_v41  ;;  %v958_v51 = vmul.f32 %v2121_v0, %v936_v35 }
  0xf4   : > { %v1737_v47 = vpop.f32.mrf.mxu0  ;;  %v673_v48 = vld [vmem:[#allocation2 + $0x48] sm:$0xff]  ;;  %v975_v50 = vsel %vm454_vm0, %v955_v42, 0.0  ;;  %v864_v57 = vpop.f32.mrf.mxu1 }
  0xf5   : > { %v938_v52 = vmax.f32 %v922_v44, 0.0  ;;  %v921_v54 = vadd.f32 %v2114_v53, %v899_v45  ;;  %661 = vst.msk [vmem:[#allocation2 + $0x68] sm:$0xff] %vm454_vm0, %v1737_v47  ;;  %v902_v55 = vadd.f32 %v1763_v31, %v673_v48  ;;  %v957_v56 = vmul.f32 %v2121_v0, %v935_v43 }
  0xf6   : > { %v672_v58 = vld [vmem:[#allocation2 + $0x40] sm:$0xff]  ;;  %976 = vadd.xlane.f32.xlu1 %v975_v50  ;;  %v629_v59 = vpop.f32.mrf.mxu0  ;;  %v1769_v4 = vpop.f32.mrf.mxu1  ;;  %v984_v7 = vsel %vm454_vm0, %v958_v51, 0.0 }
  0xf7   : > { %v937_v60 = vmax.f32 %v921_v54, 0.0  ;;  %v924_v61 = vadd.f32 %v2114_v53, %v902_v55  ;;  %v901_v62 = vadd.f32 %v854_v39, %v672_v58  ;;  %660 = vst.msk [vmem:[#allocation2 + $0x60] sm:$0xff] %vm454_vm0, %v629_v59  ;;  %v981_v63 = vsel %vm454_vm0, %v957_v56, 0.0 }
  0xf8   : > { %v675_v5 = vld [vmem:[#allocation2 + $0x58] sm:$0xff]  ;;  %982 = vadd.xlane.f32.xlu0 %v981_v63  ;;  %v1740_v6 = vpop.f32.mrf.mxu0  ;;  %v960_v8 = vmul.f32 %v2121_v0, %v938_v52  ;;  %v874_v13 = vpop.f32.mrf.mxu1  ;;  %v1021_v59 = vrot.slane %v1942_v3, %v2108_v49 }
  0xf9   : > { %v940_v9 = vmax.f32 %v924_v61, 0.0  ;;  %v923_v10 = vadd.f32 %v2114_v53, %v901_v62  ;;  %v904_v11 = vadd.f32 %v1766_v46, %v675_v5  ;;  %663 = vst.msk [vmem:[#allocation2 + $0x78] sm:$0xff] %vm454_vm0, %v1740_v6  ;;  %v959_v12 = vmul.f32 %v2121_v0, %v937_v60 }
  0xfa   : > { %v674_v14 = vld [vmem:[#allocation2 + $0x50] sm:$0xff]  ;;  %985 = vadd.xlane.f32.xlu1 %v984_v7  ;;  %v639_v15 = vpop.f32.mrf.mxu0  ;;  %v990_v21 = vsel %vm454_vm0, %v960_v8, 0.0  ;;  %v1772_v22 = vpop.f32.mrf.mxu1 }
  0xfb   : > { %v939_v16 = vmax.f32 %v923_v10, 0.0  ;;  %v926_v17 = vadd.f32 %v2114_v53, %v904_v11  ;;  %v903_v18 = vadd.f32 %v864_v57, %v674_v14  ;;  %662 = vst.msk [vmem:[#allocation2 + $0x70] sm:$0xff] %vm454_vm0, %v639_v15  ;;  %v987_v19 = vsel %vm454_vm0, %v959_v12, 0.0 }
  0xfc   : > { %v677_v20 = vld [vmem:[#allocation2 + $0x68] sm:$0xff]  ;;  %988 = vadd.xlane.f32.xlu0 %v987_v19  ;;  %v962_v23 = vmul.f32 %v2121_v0, %v940_v9  ;;  %v884_v34 = vpop.f32.mrf.mxu1 }
  0xfd   : > { %v942_v24 = vmax.f32 %v926_v17, 0.0  ;;  %v925_v25 = vadd.f32 %v2114_v53, %v903_v18  ;;  %v906_v26 = vadd.f32 %v1769_v4, %v677_v20  ;;  %v961_v27 = vmul.f32 %v2121_v0, %v939_v16 }
  0xfe   : > { %v676_v28 = vld [vmem:[#allocation2 + $0x60] sm:$0xff]  ;;  %991 = vadd.xlane.f32.xlu1 %v990_v21  ;;  %v996_v35 = vsel %vm454_vm0, %v962_v23, 0.0 }
  0xff   : > { %v941_v29 = vmax.f32 %v925_v25, 0.0  ;;  %v928_v30 = vadd.f32 %v2114_v53, %v906_v26  ;;  %v905_v31 = vadd.f32 %v874_v13, %v676_v28  ;;  %v993_v32 = vsel %vm454_vm0, %v961_v27, 0.0 }
 0x100   : > { %v679_v33 = vld [vmem:[#allocation2 + $0x78] sm:$0xff]  ;;  %994 = vadd.xlane.f32.xlu0 %v993_v32  ;;  %v964_v36 = vmul.f32 %v2121_v0, %v942_v24 }
 0x101   : > { %v944_v37 = vmax.f32 %v928_v30, 0.0  ;;  %v927_v38 = vadd.f32 %v2114_v53, %v905_v31  ;;  %v908_v39 = vadd.f32 %v1772_v22, %v679_v33  ;;  %v963_v40 = vmul.f32 %v2121_v0, %v941_v29 }
 0x102   : > { %v678_v41 = vld [vmem:[#allocation2 + $0x70] sm:$0xff]  ;;  %997 = vadd.xlane.f32.xlu1 %v996_v35  ;;  %v1002_v46 = vsel %vm454_vm0, %v964_v36, 0.0 }
 0x103   : > { %v943_v42 = vmax.f32 %v927_v38, 0.0  ;;  %v930_v43 = vadd.f32 %v2114_v53, %v908_v39  ;;  %v907_v44 = vadd.f32 %v884_v34, %v678_v41  ;;  %v999_v45 = vsel %vm454_vm0, %v963_v40, 0.0 }
 0x104   : > { %1000 = vadd.xlane.f32.xlu0 %v999_v45  ;;  %v966_v51 = vmul.f32 %v2121_v0, %v944_v37 }
 0x105   : > { %v946_v47 = vmax.f32 %v930_v43, 0.0  ;;  %v929_v48 = vadd.f32 %v2114_v53, %v907_v44  ;;  %v965_v50 = vmul.f32 %v2121_v0, %v943_v42 }
 0x106   : > { %1003 = vadd.xlane.f32.xlu1 %v1002_v46  ;;  %v1008_v55 = vsel %vm454_vm0, %v966_v51, 0.0 }
 0x107   : > { %v945_v52 = vmax.f32 %v929_v48, 0.0  ;;  %v1005_v54 = vsel %vm454_vm0, %v965_v50, 0.0  ;;  %v968_v57 = vmul.f32 %v2121_v0, %v946_v47 }
 0x108   : > { %1006 = vadd.xlane.f32.xlu0 %v1005_v54 }
 0x109   : > { %v967_v56 = vmul.f32 %v2121_v0, %v945_v52  ;;  %v1014_v53 = vsel %vm454_vm0, %v968_v57, 0.0 }
 0x10a   : > { %1009 = vadd.xlane.f32.xlu1 %v1008_v55 }
 0x10b   : > { %v1011_v58 = vsel %vm454_vm0, %v967_v56, 0.0 }
 0x10c   : > { %1012 = vadd.xlane.f32.xlu0 %v1011_v58 }
 0x10e   : > { %1015 = vadd.xlane.f32.xlu1 %v1014_v53 }
 0x177   : > { %v974_v60 = vpop.xlane.xlu0 %973 }
 0x178   : > { %v1024_v61 = vadd.f32 %v1021_v59, %v974_v60 }
 0x17a   : > { %1041 = vst.msk [vmem:[%s2399_s8 + $0x8] sm:$0xff] %vm1039_vm1, %v1024_v61 }
 0x17b   : > { %v971_v62 = vpop.xlane.xlu0 %970  ;;  %v980_v0 = vpop.xlane.xlu1 %979 }
 0x17c   : > { %v1023_v63 = vadd.f32 %v1021_v59, %v971_v62  ;;  %v1026_v4 = vadd.f32 %v1021_v59, %v980_v0 }
 0x17e   : > { %1040 = vst.msk [vmem:[%s2399_s8] sm:$0xff] %vm1039_vm1, %v1023_v63  ;;  %1043 = vst.msk [vmem:[%s2399_s8 + $0x18] sm:$0xff] %vm1039_vm1, %v1026_v4 }
 0x17f   : > { %v977_v49 = vpop.xlane.xlu1 %976 }
 0x180   : > { %v1025_v5 = vadd.f32 %v1021_v59, %v977_v49 }
 0x181   : > { %v983_v6 = vpop.xlane.xlu0 %982 }
 0x182   : > { %1042 = vst.msk [vmem:[%s2399_s8 + $0x10] sm:$0xff] %vm1039_vm1, %v1025_v5  ;;  %v1027_v7 = vadd.f32 %v1021_v59, %v983_v6 }
 0x183   : > { %v986_v8 = vpop.xlane.xlu1 %985 }
 0x184   : > { %1044 = vst.msk [vmem:[%s2399_s8 + $0x20] sm:$0xff] %vm1039_vm1, %v1027_v7  ;;  %v1028_v9 = vadd.f32 %v1021_v59, %v986_v8 }
 0x185   : > { %v989_v10 = vpop.xlane.xlu0 %988 }
 0x186   : > { %1045 = vst.msk [vmem:[%s2399_s8 + $0x28] sm:$0xff] %vm1039_vm1, %v1028_v9  ;;  %v1029_v11 = vadd.f32 %v1021_v59, %v989_v10 }
 0x187   : > { %v992_v12 = vpop.xlane.xlu1 %991 }
 0x188   : > { %1046 = vst.msk [vmem:[%s2399_s8 + $0x30] sm:$0xff] %vm1039_vm1, %v1029_v11  ;;  %v1030_v13 = vadd.f32 %v1021_v59, %v992_v12 }
 0x189   : > { %v995_v14 = vpop.xlane.xlu0 %994 }
 0x18a   : > { %1047 = vst.msk [vmem:[%s2399_s8 + $0x38] sm:$0xff] %vm1039_vm1, %v1030_v13  ;;  %v1031_v15 = vadd.f32 %v1021_v59, %v995_v14 }
 0x18b   : > { %v998_v16 = vpop.xlane.xlu1 %997 }
 0x18c   : > { %1048 = vst.msk [vmem:[%s2399_s8 + $0x40] sm:$0xff] %vm1039_vm1, %v1031_v15  ;;  %v1032_v17 = vadd.f32 %v1021_v59, %v998_v16 }
 0x18d   : > { %v1001_v18 = vpop.xlane.xlu0 %1000 }
 0x18e   : > { %1049 = vst.msk [vmem:[%s2399_s8 + $0x48] sm:$0xff] %vm1039_vm1, %v1032_v17  ;;  %v1033_v19 = vadd.f32 %v1021_v59, %v1001_v18 }
 0x18f   : > { %v1004_v20 = vpop.xlane.xlu1 %1003 }
 0x190   : > { %1050 = vst.msk [vmem:[%s2399_s8 + $0x50] sm:$0xff] %vm1039_vm1, %v1033_v19  ;;  %v1034_v21 = vadd.f32 %v1021_v59, %v1004_v20 }
 0x191   : > { %v1007_v22 = vpop.xlane.xlu0 %1006 }
 0x192   : > { %1051 = vst.msk [vmem:[%s2399_s8 + $0x58] sm:$0xff] %vm1039_vm1, %v1034_v21  ;;  %v1035_v23 = vadd.f32 %v1021_v59, %v1007_v22 }
 0x193   : > { %v1010_v24 = vpop.xlane.xlu1 %1009 }
 0x194   : > { %1052 = vst.msk [vmem:[%s2399_s8 + $0x60] sm:$0xff] %vm1039_vm1, %v1035_v23  ;;  %v1036_v25 = vadd.f32 %v1021_v59, %v1010_v24 }
 0x195   : > { %v1013_v26 = vpop.xlane.xlu0 %1012 }
 0x196   : > { %1053 = vst.msk [vmem:[%s2399_s8 + $0x68] sm:$0xff] %vm1039_vm1, %v1036_v25  ;;  %v1037_v27 = vadd.f32 %v1021_v59, %v1013_v26 }
 0x197   : > { %v1016_v28 = vpop.xlane.xlu1 %1015 }
 0x198   : > { %1054 = vst.msk [vmem:[%s2399_s8 + $0x70] sm:$0xff] %vm1039_vm1, %v1037_v27  ;;  %v1038_v29 = vadd.f32 %v1021_v59, %v1016_v28 }
 0x19a   : > { %1055 = vst.msk [vmem:[%s2399_s8 + $0x78] sm:$0xff] %vm1039_vm1, %v1038_v29 }
 0x19b PF: > { %v1091_v30 = vld [vmem:[%s2395_s4 + $0x18] sm:$0xff]  ;;  %v1090_v31 = vld [vmem:[%s2395_s4 + $0x10] sm:$0xff]  ;;  %v1089_v32 = vld [vmem:[%s2395_s4 + $0x8] sm:$0xff]  ;;  %vm1092_vm2 = vcmask 261120   ;;  %v1303_v51 = vlaneseq  ;;  %vm1432_vm3 = vcmask 7168  }
 0x19c   : > { %1773 = vmatprep.subr.mxu0 %v1091_v30  ;;  %1805 = vmatprep.subr.mxu1 %v1091_v30  ;;  %v1088_v33 = vld [vmem:[%s2395_s4] sm:$0xff]  ;;  %v1073_v36 = vld [vmem:[%s1947_s23 + $0x8] sm:$0xff]  ;;  %v1074_v38 = vld [vmem:[%s1947_s23 + $0x10] sm:$0xff] }
 0x19d   : > { %1774 = vmatpush3.msra.mxu0 %v1091_v30  ;;  %1809 = vmatpush3.msra.mxu1 %v1091_v30  ;;  %v1072_v34 = vld [vmem:[%s1947_s23] sm:$0xff]  ;;  %v1081_v37 = vld [vmem:[%s1947_s23 + $0x48] sm:$0xff]  ;;  %v1082_v39 = vld [vmem:[%s1947_s23 + $0x50] sm:$0xff]  ;;  %v1304_v52 = vshrl.u32 %v1303_v51, 7 }
 0x19e   : > { %1775 = vmatprep.subr.mxu0 %v1090_v31  ;;  %1806 = vmatprep.subr.mxu1 %v1090_v31  ;;  %v1080_v35 = vld [vmem:[%s1947_s23 + $0x40] sm:$0xff]  ;;  %v1075_v40 = vld [vmem:[%s1947_s23 + $0x18] sm:$0xff]  ;;  %v1077_v44 = vld [vmem:[%s1947_s23 + $0x28] sm:$0xff] }
 0x19f   : > { %1776 = vmatpush3.msra.mxu0 %v1090_v31  ;;  %1810 = vmatpush3.msra.mxu1 %v1090_v31  ;;  %v1083_v41 = vld [vmem:[%s1947_s23 + $0x58] sm:$0xff]  ;;  %v1076_v42 = vld [vmem:[%s1947_s23 + $0x20] sm:$0xff]  ;;  %v1085_v45 = vld [vmem:[%s1947_s23 + $0x68] sm:$0xff]  ;;  %v2290_v54 = vsub.s32 0, %v1304_v52 }
 0x1a0   : > { %1777 = vmatprep.subr.mxu0 %v1089_v32  ;;  %1807 = vmatprep.subr.mxu1 %v1089_v32  ;;  %v1084_v43 = vld [vmem:[%s1947_s23 + $0x60] sm:$0xff]  ;;  %v1078_v46 = vld [vmem:[%s1947_s23 + $0x30] sm:$0xff]  ;;  %v1079_v48 = vld [vmem:[%s1947_s23 + $0x38] sm:$0xff] }
 0x1a1   : > { %1778 = vmatpush3.msra.mxu0 %v1089_v32  ;;  %1811 = vmatpush3.msra.mxu1 %v1089_v32  ;;  %v1086_v47 = vld [vmem:[%s1947_s23 + $0x70] sm:$0xff]  ;;  %v1087_v50 = vld [vmem:[%s1947_s23 + $0x78] sm:$0xff]  ;;  %v1057_v55 = vld [vmem:[#allocation2 + $0x8] sm:$0xff]  ;;  %v2294_v57 = vrot.slane %v1935_v1, %v2290_v54  ;;  %v2300_v12 = vrot.slane %v1940_v2, %v2290_v54 }
 0x1a2   : > { %1779 = vmatprep.subr.mxu0 %v1088_v33  ;;  %1808 = vmatprep.subr.mxu1 %v1088_v33  ;;  %v1065_v56 = vld [vmem:[#allocation2 + $0x48] sm:$0xff]  ;;  %v1056_v59 = vld [vmem:[#allocation2] sm:$0xff]  ;;  %v1059_v7 = vld [vmem:[#allocation2 + $0x18] sm:$0xff] }
 0x1a3   : > { %1780 = vmatpush3.msra.mxu0 %v1088_v33  ;;  %1812 = vmatpush3.msra.mxu1 %v1088_v33  ;;  %v1064_v60 = vld [vmem:[#allocation2 + $0x40] sm:$0xff]  ;;  %v1067_v8 = vld [vmem:[#allocation2 + $0x58] sm:$0xff]  ;;  %v1058_v10 = vld [vmem:[#allocation2 + $0x10] sm:$0xff] }
 0x1a4   : > { %1781 = vmatprep.mubr.msk.f32.mxu0 %vm1092_vm2, %v1072_v34  ;;  %1793 = vmatprep.mubr.msk.f32.mxu1 %vm1092_vm2, %v1080_v35  ;;  %v1066_v11 = vld [vmem:[#allocation2 + $0x50] sm:$0xff]  ;;  %v1061_v21 = vld [vmem:[#allocation2 + $0x28] sm:$0xff]  ;;  %v1060_v30 = vld [vmem:[#allocation2 + $0x20] sm:$0xff] }
 0x1a5   : > { %1782 = vmatmul.mubr.msk.f32.vlgmr.msra.gmra.mxu0 %vm1092_vm2, %v1073_v36  ;;  %1794 = vmatmul.mubr.msk.f32.vlgmr.msra.gmra.mxu1 %vm1092_vm2, %v1081_v37  ;;  %v1069_v36 = vld [vmem:[#allocation2 + $0x68] sm:$0xff]  ;;  %v1068_v37 = vld [vmem:[#allocation2 + $0x60] sm:$0xff] }
 0x1a6   : > { %1784 = vmatprep.mubr.msk.f32.mxu0 %vm1092_vm2, %v1074_v38  ;;  %1796 = vmatprep.mubr.msk.f32.mxu1 %vm1092_vm2, %v1082_v39 }
 0x1a9   : > { %1785 = vmatmul.mubr.msk.f32.gmra.mxu0 %vm1092_vm2, %v1075_v40  ;;  %1797 = vmatmul.mubr.msk.f32.gmra.mxu1 %vm1092_vm2, %v1083_v41 }
 0x1aa   : > { %1787 = vmatprep.mubr.msk.f32.mxu0 %vm1092_vm2, %v1076_v42  ;;  %1799 = vmatprep.mubr.msk.f32.mxu1 %vm1092_vm2, %v1084_v43 }
 0x1ad   : > { %1788 = vmatmul.mubr.msk.f32.gmra.mxu0 %vm1092_vm2, %v1077_v44  ;;  %1800 = vmatmul.mubr.msk.f32.gmra.mxu1 %vm1092_vm2, %v1085_v45 }
 0x1ae   : > { %1790 = vmatprep.mubr.msk.f32.mxu0 %vm1092_vm2, %v1078_v46  ;;  %1802 = vmatprep.mubr.msk.f32.mxu1 %vm1092_vm2, %v1086_v47 }
 0x1b1   : > { %1791 = vmatmul.mubr.msk.f32.gmra.mxu0 %vm1092_vm2, %v1079_v48  ;;  %1803 = vmatmul.mubr.msk.f32.gmra.mxu1 %vm1092_vm2, %v1087_v50 }
 0x265   : > { %v1783_v58 = vpop.f32.mrf.mxu0  ;;  %v1795_v53 = vpop.f32.mrf.mxu1 }
 0x266   : > { %v1287_v61 = vadd.f32 %v1783_v58, %v1057_v55  ;;  %v1295_v62 = vadd.f32 %v1795_v53, %v1065_v56 }
 0x267   : > { %v1207_v0 = vpop.f32.mrf.mxu0  ;;  %v1247_v63 = vpop.f32.mrf.mxu1 }
 0x268   : > { %v1309_v4 = vadd.f32 %v2294_v57, %v1287_v61  ;;  %v1317_v49 = vadd.f32 %v2294_v57, %v1295_v62  ;;  %v1286_v5 = vadd.f32 %v1207_v0, %v1056_v59  ;;  %v1294_v6 = vadd.f32 %v1247_v63, %v1064_v60  ;;  %v1063_v60 = vld [vmem:[#allocation2 + $0x38] sm:$0xff]  ;;  %v1062_v61 = vld [vmem:[#allocation2 + $0x30] sm:$0xff] }
 0x269   : > { %v1786_v9 = vpop.f32.mrf.mxu0  ;;  %v1798_v1 = vpop.f32.mrf.mxu1 }
 0x26a   : > { %v1325_v13 = vmax.f32 %v1309_v4, 0.0  ;;  %v1333_v14 = vmax.f32 %v1317_v49, 0.0  ;;  %v1308_v15 = vadd.f32 %v2294_v57, %v1286_v5  ;;  %v1316_v16 = vadd.f32 %v2294_v57, %v1294_v6 }
 0x26b   : > { %v1289_v17 = vadd.f32 %v1786_v9, %v1059_v7  ;;  %v1217_v18 = vpop.f32.mrf.mxu0  ;;  %v1297_v19 = vadd.f32 %v1798_v1, %v1067_v8  ;;  %v1257_v20 = vpop.f32.mrf.mxu1 }
 0x26c   : > { %v1324_v22 = vmax.f32 %v1308_v15, 0.0  ;;  %v1332_v23 = vmax.f32 %v1316_v16, 0.0  ;;  %v1288_v24 = vadd.f32 %v1217_v18, %v1058_v10  ;;  %v1296_v25 = vadd.f32 %v1257_v20, %v1066_v11  ;;  %v1071_v11 = vld [vmem:[#allocation2 + $0x78] sm:$0xff] }
 0x26d   : > { %v1311_v26 = vadd.f32 %v2294_v57, %v1289_v17  ;;  %v1319_v2 = vadd.f32 %v2294_v57, %v1297_v19  ;;  %v1355_v27 = vmul.f32 %v2300_v12, %v1333_v14  ;;  %v1347_v28 = vmul.f32 %v2300_v12, %v1325_v13  ;;  %v1789_v29 = vpop.f32.mrf.mxu0  ;;  %v1801_v31 = vpop.f32.mrf.mxu1  ;;  %v1070_v13 = vld [vmem:[#allocation2 + $0x70] sm:$0xff] }
 0x26e   : > { %v1310_v32 = vadd.f32 %v2294_v57, %v1288_v24  ;;  %v1318_v33 = vadd.f32 %v2294_v57, %v1296_v25  ;;  %v1291_v34 = vadd.f32 %v1789_v29, %v1061_v21  ;;  %v1346_v35 = vmul.f32 %v2300_v12, %v1324_v22 }
 0x26f   : > { %v1327_v38 = vmax.f32 %v1311_v26, 0.0  ;;  %v1335_v39 = vmax.f32 %v1319_v2, 0.0  ;;  %v1389_v40 = vsel %vm1092_vm2, %v1355_v27, 0.0  ;;  %v1365_v41 = vsel %vm1092_vm2, %v1347_v28, 0.0  ;;  %v1227_v42 = vpop.f32.mrf.mxu0  ;;  %v1267_v43 = vpop.f32.mrf.mxu1 }
 0x270   : > { %1390 = vadd.xlane.f32.xlu1 %v1389_v40  ;;  %1366 = vadd.xlane.f32.xlu0 %v1365_v41  ;;  %v1290_v44 = vadd.f32 %v1227_v42, %v1060_v30  ;;  %v1299_v46 = vadd.f32 %v1801_v31, %v1069_v36  ;;  %v1298_v47 = vadd.f32 %v1267_v43, %v1068_v37  ;;  %v1326_v50 = vmax.f32 %v1310_v32, 0.0 }
 0x271   : > { %v1349_v45 = vmul.f32 %v2300_v12, %v1327_v38  ;;  %v1792_v48 = vpop.f32.mrf.mxu0  ;;  %v1334_v51 = vmax.f32 %v1318_v33, 0.0  ;;  %v1313_v52 = vadd.f32 %v2294_v57, %v1291_v34  ;;  %v1357_v55 = vmul.f32 %v2300_v12, %v1335_v39  ;;  %v1804_v0 = vpop.f32.mrf.mxu1 }
 0x272   : > { %v1312_v56 = vadd.f32 %v2294_v57, %v1290_v44  ;;  %v1362_v53 = vsel %vm1092_vm2, %v1346_v35, 0.0  ;;  %v1354_v59 = vmul.f32 %v2300_v12, %v1332_v23  ;;  %v1321_v63 = vadd.f32 %v2294_v57, %v1299_v46 }
 0x273   : > { %v1371_v58 = vsel %vm1092_vm2, %v1349_v45, 0.0  ;;  %v1237_v62 = vpop.f32.mrf.mxu0  ;;  %v1320_v4 = vadd.f32 %v2294_v57, %v1298_v47  ;;  %v1395_v49 = vsel %vm1092_vm2, %v1357_v55, 0.0  ;;  %v1329_v5 = vmax.f32 %v1313_v52, 0.0  ;;  %v1277_v14 = vpop.f32.mrf.mxu1 }
 0x274   : > { %1372 = vadd.xlane.f32.xlu1 %v1371_v58  ;;  %1363 = vadd.xlane.f32.xlu0 %v1362_v53  ;;  %v1293_v6 = vadd.f32 %v1792_v48, %v1063_v60  ;;  %v1292_v7 = vadd.f32 %v1237_v62, %v1062_v61  ;;  %v1328_v8 = vmax.f32 %v1312_v56, 0.0  ;;  %v1386_v9 = vsel %vm1092_vm2, %v1354_v59, 0.0 }
 0x275   : > { %v1348_v10 = vmul.f32 %v2300_v12, %v1326_v50  ;;  %v1356_v1 = vmul.f32 %v2300_v12, %v1334_v51  ;;  %v1337_v15 = vmax.f32 %v1321_v63, 0.0  ;;  %v1336_v16 = vmax.f32 %v1320_v4, 0.0 }
 0x276   : > { %v1315_v17 = vadd.f32 %v2294_v57, %v1293_v6  ;;  %v1314_v18 = vadd.f32 %v2294_v57, %v1292_v7  ;;  %v1301_v19 = vadd.f32 %v1804_v0, %v1071_v11  ;;  %v1300_v20 = vadd.f32 %v1277_v14, %v1070_v13 }
 0x277   : > { %v1368_v21 = vsel %vm1092_vm2, %v1348_v10, 0.0  ;;  %v1392_v22 = vsel %vm1092_vm2, %v1356_v1, 0.0  ;;  %v1351_v23 = vmul.f32 %v2300_v12, %v1329_v5  ;;  %v1350_v24 = vmul.f32 %v2300_v12, %v1328_v8 }
 0x278   : > { %1396 = vadd.xlane.f32.xlu1 %v1395_v49  ;;  %1387 = vadd.xlane.f32.xlu0 %v1386_v9  ;;  %v1331_v25 = vmax.f32 %v1315_v17, 0.0  ;;  %v1330_v26 = vmax.f32 %v1314_v18, 0.0  ;;  %v1323_v2 = vadd.f32 %v2294_v57, %v1301_v19  ;;  %v1322_v27 = vadd.f32 %v2294_v57, %v1300_v20 }
 0x279   : > { %v1377_v28 = vsel %vm1092_vm2, %v1351_v23, 0.0  ;;  %v1374_v29 = vsel %vm1092_vm2, %v1350_v24, 0.0  ;;  %v1359_v30 = vmul.f32 %v2300_v12, %v1337_v15  ;;  %v1358_v31 = vmul.f32 %v2300_v12, %v1336_v16 }
 0x27a   : > { %v1339_v32 = vmax.f32 %v1323_v2, 0.0  ;;  %v1338_v33 = vmax.f32 %v1322_v27, 0.0  ;;  %v1353_v36 = vmul.f32 %v2300_v12, %v1331_v25  ;;  %v1352_v57 = vmul.f32 %v2300_v12, %v1330_v26 }
 0x27b   : > { %v1401_v34 = vsel %vm1092_vm2, %v1359_v30, 0.0  ;;  %v1398_v35 = vsel %vm1092_vm2, %v1358_v31, 0.0  ;;  %v1414_v43 = vrot.slane %v1942_v3, %v2290_v54 }
 0x27c   : > { %1369 = vadd.xlane.f32.xlu1 %v1368_v21  ;;  %1393 = vadd.xlane.f32.xlu0 %v1392_v22  ;;  %v1383_v37 = vsel %vm1092_vm2, %v1353_v36, 0.0  ;;  %v1380_v38 = vsel %vm1092_vm2, %v1352_v57, 0.0  ;;  %v1361_v39 = vmul.f32 %v2300_v12, %v1339_v32  ;;  %v1360_v40 = vmul.f32 %v2300_v12, %v1338_v33 }
 0x27e   : > { %v1407_v41 = vsel %vm1092_vm2, %v1361_v39, 0.0  ;;  %v1404_v42 = vsel %vm1092_vm2, %v1360_v40, 0.0 }
 0x280   : > { %1378 = vadd.xlane.f32.xlu1 %v1377_v28  ;;  %1375 = vadd.xlane.f32.xlu0 %v1374_v29 }
 0x284   : > { %1402 = vadd.xlane.f32.xlu1 %v1401_v34  ;;  %1399 = vadd.xlane.f32.xlu0 %v1398_v35 }
 0x288   : > { %1384 = vadd.xlane.f32.xlu1 %v1383_v37  ;;  %1381 = vadd.xlane.f32.xlu0 %v1380_v38 }
 0x28c   : > { %1408 = vadd.xlane.f32.xlu1 %v1407_v41  ;;  %1405 = vadd.xlane.f32.xlu0 %v1404_v42 }
 0x2f9   : > { %v1391_v44 = vpop.xlane.xlu1 %1390  ;;  %v1367_v45 = vpop.xlane.xlu0 %1366 }
 0x2fa   : > { %v1425_v46 = vadd.f32 %v1414_v43, %v1391_v44  ;;  %v1417_v12 = vadd.f32 %v1414_v43, %v1367_v45 }
 0x2fc   : > { %1442 = vst.msk [vmem:[%s1952_s27 + $0x48] sm:$0xff] %vm1432_vm3, %v1425_v46  ;;  %1434 = vst.msk [vmem:[%s1952_s27 + $0x8] sm:$0xff] %vm1432_vm3, %v1417_v12 }
 0x2fd   : > { %v1373_v47 = vpop.xlane.xlu1 %1372  ;;  %v1364_v48 = vpop.xlane.xlu0 %1363 }
 0x2fe   : > { %v1419_v50 = vadd.f32 %v1414_v43, %v1373_v47  ;;  %v1416_v51 = vadd.f32 %v1414_v43, %v1364_v48 }
 0x300   : > { %1436 = vst.msk [vmem:[%s1952_s27 + $0x18] sm:$0xff] %vm1432_vm3, %v1419_v50  ;;  %1433 = vst.msk [vmem:[%s1952_s27] sm:$0xff] %vm1432_vm3, %v1416_v51 }
 0x301   : > { %v1397_v3 = vpop.xlane.xlu1 %1396  ;;  %v1388_v54 = vpop.xlane.xlu0 %1387 }
 0x302   : > { %v1427_v52 = vadd.f32 %v1414_v43, %v1397_v3  ;;  %v1424_v55 = vadd.f32 %v1414_v43, %v1388_v54 }
 0x304   : > { %1444 = vst.msk [vmem:[%s1952_s27 + $0x58] sm:$0xff] %vm1432_vm3, %v1427_v52  ;;  %1441 = vst.msk [vmem:[%s1952_s27 + $0x40] sm:$0xff] %vm1432_vm3, %v1424_v55 }
 0x305   : > { %v1370_v56 = vpop.xlane.xlu1 %1369  ;;  %v1394_v58 = vpop.xlane.xlu0 %1393 }
 0x306   : > { %v1418_v53 = vadd.f32 %v1414_v43, %v1370_v56  ;;  %v1426_v59 = vadd.f32 %v1414_v43, %v1394_v58 }
 0x308   : > { %1435 = vst.msk [vmem:[%s1952_s27 + $0x10] sm:$0xff] %vm1432_vm3, %v1418_v53  ;;  %1443 = vst.msk [vmem:[%s1952_s27 + $0x50] sm:$0xff] %vm1432_vm3, %v1426_v59 }
 0x309   : > { %v1379_v60 = vpop.xlane.xlu1 %1378  ;;  %v1376_v61 = vpop.xlane.xlu0 %1375 }
 0x30a   : > { %v1421_v62 = vadd.f32 %v1414_v43, %v1379_v60  ;;  %v1420_v0 = vadd.f32 %v1414_v43, %v1376_v61 }
 0x30c   : > { %1438 = vst.msk [vmem:[%s1952_s27 + $0x28] sm:$0xff] %vm1432_vm3, %v1421_v62  ;;  %1437 = vst.msk [vmem:[%s1952_s27 + $0x20] sm:$0xff] %vm1432_vm3, %v1420_v0 }
 0x30d   : > { %v1403_v63 = vpop.xlane.xlu1 %1402  ;;  %v1400_v4 = vpop.xlane.xlu0 %1399 }
 0x30e   : > { %v1429_v49 = vadd.f32 %v1414_v43, %v1403_v63  ;;  %v1428_v5 = vadd.f32 %v1414_v43, %v1400_v4 }
 0x310   : > { %1446 = vst.msk [vmem:[%s1952_s27 + $0x68] sm:$0xff] %vm1432_vm3, %v1429_v49  ;;  %1445 = vst.msk [vmem:[%s1952_s27 + $0x60] sm:$0xff] %vm1432_vm3, %v1428_v5 }
 0x311   : > { %v1385_v6 = vpop.xlane.xlu1 %1384  ;;  %v1382_v7 = vpop.xlane.xlu0 %1381 }
 0x312   : > { %v1423_v8 = vadd.f32 %v1414_v43, %v1385_v6  ;;  %v1422_v9 = vadd.f32 %v1414_v43, %v1382_v7 }
 0x314   : > { %1440 = vst.msk [vmem:[%s1952_s27 + $0x38] sm:$0xff] %vm1432_vm3, %v1423_v8  ;;  %1439 = vst.msk [vmem:[%s1952_s27 + $0x30] sm:$0xff] %vm1432_vm3, %v1422_v9 }
 0x315   : > { %v1409_v10 = vpop.xlane.xlu1 %1408  ;;  %v1406_v1 = vpop.xlane.xlu0 %1405 }
 0x316   : > { %v1431_v11 = vadd.f32 %v1414_v43, %v1409_v10  ;;  %v1430_v13 = vadd.f32 %v1414_v43, %v1406_v1 }
 0x318   : > { %1448 = vst.msk [vmem:[%s1952_s27 + $0x78] sm:$0xff] %vm1432_vm3, %v1431_v11  ;;  %1447 = vst.msk [vmem:[%s1952_s27 + $0x70] sm:$0xff] %vm1432_vm3, %v1430_v13 }
 0x319 PF: > { %s22_s13 = sadd.s32 1, %s1859_s13   ;;  %s2401_s11 = smov %s1855_s12 }
 0x31a   : > { %p19_p7 = scmp.ge.s32.totalorder %s22_s13, 4   ;;  %s2402_s12 = smov %s2404_s7 }
 0x31c   :  { %21 = sbr.rel (!%p19_p7) target bundleno = 3 (0x3), region = 104 }

</bundles_post_ra>
